<compile_context>
chip_gen: v7x
topology: tpu7x:2x2x1
jax: 0.10.0
libtpu: 0.0.40
codegen_flags: <defaults>
</compile_context>

<pallas_src>
import functools

import jax
import jax.numpy as jnp
from jax import lax
from jax.experimental import pallas as pl
from jax.experimental.pallas import tpu as pltpu

_EPS = 1e-6
_LANE = 128
_SUBLANE = 8
_MAX_TILE_ROWS = 4096            # 4096 x 128 f32 = 2 MiB per input pipeline buffer
_VMEM_LIMIT_BYTES = 32 << 20     # safe on v5e/v6e (128 MiB phys) and v7x (64 MiB phys)


def _fold(block, tile_rows):
    # (tile_rows, 128) -> (8, 128): sublane-aligned reshape + plain vreg adds
    # (VPU only).  The expensive cross-lane reduction happens once, in the
    # wrapper, on the tiny partial-sum outputs.
    return block.reshape(tile_rows // _SUBLANE, _SUBLANE, _LANE).sum(axis=0)


def _dice_kernel(x_ref, t_ref, inter_ref, card_ref, *, steps, tile_rows,
                 total_rows, need_mask):
    i = pl.program_id(0)  # parallel chunk (megacore / v7x two-TC split)
    j = pl.program_id(1)  # sequential reduction step within the chunk

    @pl.when(j == 0)
    def _():
        inter_ref[...] = jnp.zeros_like(inter_ref)
        card_ref[...] = jnp.zeros_like(card_ref)

    x = x_ref[...].astype(jnp.float32)
    t = t_ref[...].astype(jnp.float32)
    prod = x * t
    summ = x + t

    def accumulate(p, s):
        inter_ref[...] += _fold(p, tile_rows)
        card_ref[...] += _fold(s, tile_rows)

    if need_mask:
        # Only the edge step (partial last tile or the duplicated/clamped tile
        # of an odd split) pays for the mask; interior steps accumulate raw.
        row0 = (i * steps + j) * tile_rows
        is_edge = row0 + tile_rows > total_rows

        @pl.when(jnp.logical_not(is_edge))
        def _():
            accumulate(prod, summ)

        @pl.when(is_edge)
        def _():
            row_idx = row0 + lax.broadcasted_iota(jnp.int32, (tile_rows, _LANE), 0)
            valid = row_idx < total_rows
            accumulate(jnp.where(valid, prod, 0.0), jnp.where(valid, summ, 0.0))
    else:
        accumulate(prod, summ)


def dice_loss(x: jax.Array, target: jax.Array) -> jax.Array:
    """x: (N, C, H, W) scores; target: same shape (one-hot, float-like)."""
    assert x.shape == target.shape, (x.shape, target.shape)
    n = x.size

    xf = x.reshape(-1)        # contiguous flatten: free metadata reshape
    tf = target.reshape(-1)

    block_elems = _SUBLANE * _LANE
    if n % block_elems != 0:
        # TODO(synk): rare ragged-tail case; this pad copies both inputs.
        # Could be avoided by masking the ragged lane tail in-kernel.
        pad = block_elems - n % block_elems
        xf = jnp.pad(xf, (0, pad))
        tf = jnp.pad(tf, (0, pad))

    rows = xf.size // _LANE                # guaranteed multiple of 8
    xf = xf.reshape(rows, _LANE)
    tf = tf.reshape(rows, _LANE)

    tile_rows = min(_MAX_TILE_ROWS, rows)  # multiple of 8
    num_tiles = pl.cdiv(rows, tile_rows)

    # Outer 'parallel' axis: 2 chunks whenever there is enough work so v7x's
    # two TensorCores each stream half the rows (near no-op on v5e/v6e).
    n_par = 2 if num_tiles >= 2 else 1
    steps = pl.cdiv(num_tiles, n_par)
    covered_rows = n_par * steps * tile_rows
    need_mask = covered_rows != rows

    if n_par * steps == num_tiles:
        in_index = lambda i, j: (i * steps + j, 0)
    else:
        # Odd tile count: clamp the one duplicated trailing block; its rows
        # are masked to zero in-kernel.
        in_index = lambda i, j: (jnp.minimum(i * steps + j, num_tiles - 1), 0)

    kernel = functools.partial(
        _dice_kernel,
        steps=steps,
        tile_rows=tile_rows,
        total_rows=rows,
        need_mask=need_mask,
    )

    inter_p, card_p = pl.pallas_call(
        kernel,
        out_shape=(
            jax.ShapeDtypeStruct((n_par * _SUBLANE, _LANE), jnp.float32),
            jax.ShapeDtypeStruct((n_par * _SUBLANE, _LANE), jnp.float32),
        ),
        grid_spec=pltpu.PrefetchScalarGridSpec(
            num_scalar_prefetch=0,
            grid=(n_par, steps),
            in_specs=[
                pl.BlockSpec((tile_rows, _LANE), in_index),
                pl.BlockSpec((tile_rows, _LANE), in_index),
            ],
            out_specs=[
                pl.BlockSpec((_SUBLANE, _LANE), lambda i, j: (i, 0)),
                pl.BlockSpec((_SUBLANE, _LANE), lambda i, j: (i, 0)),
            ],
        ),
        compiler_params=pltpu.CompilerParams(
            dimension_semantics=("parallel", "arbitrary"),
            vmem_limit_bytes=_VMEM_LIMIT_BYTES,
        ),
    )(xf, tf)

    # Tiny final combine (<= 2 x 2048 f32) + dice formula in plain JAX.
    intersection = jnp.sum(inter_p)
    cardinality = jnp.sum(card_p)
    dice_score = 2.0 * intersection / (cardinality + _EPS)
    # torch.mean(1 - dice_score) on a 0-d tensor is the identity.
    return 1.0 - dice_score


def _dice_loss_ref(x, target):
    intersection = jnp.sum(x * target)
    cardinality = jnp.sum(x + target)
    dice_score = 2.0 * intersection / (cardinality + _EPS)
    return 1.0 - dice_score


if __name__ == "__main__":
    key = jax.random.PRNGKey(0)
    kx, kt = jax.random.split(key)

    N, C, H, W = 2, 4, 16, 16
    x = jax.random.normal(kx, (N, C, H, W), dtype=jnp.float32)
    labels = jax.random.randint(kt, (N, H, W), 0, C)
    # one-hot target, NCHW, float — same shape as input (valid elementwise mul)
    target = jax.nn.one_hot(labels, C, axis=1, dtype=jnp.float32)

    loss = jax.block_until_ready(dice_loss(x, target))
    ref = _dice_loss_ref(x, target)
    assert jnp.allclose(loss, ref, rtol=1e-5, atol=1e-5), (loss, ref)
    print("KERNEL_OK")
</pallas_src>

<mosaic_0001>
module attributes {stable_mosaic.version = 11 : i64} {
  func.func @_dice_kernel(%arg0: i32, %arg1: i32, %arg2: memref<16x128xf32, #tpu.memory_space<vmem>>, %arg3: memref<16x128xf32, #tpu.memory_space<vmem>>, %arg4: memref<8x128xf32, #tpu.memory_space<vmem>>, %arg5: memref<8x128xf32, #tpu.memory_space<vmem>>) attributes {dimension_semantics = [#tpu.dimension_semantics<parallel>, #tpu.dimension_semantics<arbitrary>], iteration_bounds = array<i64: 1, 1>, scalar_prefetch = 0 : i64, scratch_operands = 0 : i64, tpu.core_type = #tpu.core_type<tc>, window_params = [{transform_indices = @transform_0, window_bounds = array<i64: 16, 128>}, {transform_indices = @transform_1, window_bounds = array<i64: 16, 128>}, {transform_indices = @transform_2, window_bounds = array<i64: 8, 128>}, {transform_indices = @transform_3, window_bounds = array<i64: 8, 128>}]} {
    %c0_i32 = arith.constant 0 : i32
    %0 = arith.cmpi eq, %arg1, %c0_i32 : i32
    %1 = arith.extui %0 : i1 to i32
    %c0_i32_0 = arith.constant 0 : i32
    %2 = arith.cmpi ne, %1, %c0_i32_0 : i32
    scf.if %2 {
      %cst_13 = arith.constant 0.000000e+00 : f32
      %17 = vector.broadcast %cst_13 : f32 to vector<8x128xf32>
      %c0_14 = arith.constant 0 : index
      %c0_15 = arith.constant 0 : index
      %18 = vector.load %arg4[%c0_14, %c0_15] : memref<8x128xf32, #tpu.memory_space<vmem>>, vector<8x128xf32>
      tpu.vector_store %arg4[%c0_14, %c0_15], %17 {strides = array<i32>} : memref<8x128xf32, #tpu.memory_space<vmem>>, vector<8x128xf32>,
      %cst_16 = arith.constant 0.000000e+00 : f32
      %19 = vector.broadcast %cst_16 : f32 to vector<8x128xf32>
      %c0_17 = arith.constant 0 : index
      %c0_18 = arith.constant 0 : index
      %20 = vector.load %arg5[%c0_17, %c0_18] : memref<8x128xf32, #tpu.memory_space<vmem>>, vector<8x128xf32>
      tpu.vector_store %arg5[%c0_17, %c0_18], %19 {strides = array<i32>} : memref<8x128xf32, #tpu.memory_space<vmem>>, vector<8x128xf32>,
    } else {
    }
    %c0 = arith.constant 0 : index
    %c0_1 = arith.constant 0 : index
    %3 = vector.load %arg2[%c0, %c0_1] : memref<16x128xf32, #tpu.memory_space<vmem>>, vector<16x128xf32>
    %c0_2 = arith.constant 0 : index
    %c0_3 = arith.constant 0 : index
    %4 = vector.load %arg3[%c0_2, %c0_3] : memref<16x128xf32, #tpu.memory_space<vmem>>, vector<16x128xf32>
    %5 = arith.mulf %3, %4 : vector<16x128xf32>
    %6 = arith.addf %3, %4 : vector<16x128xf32>
    %c0_4 = arith.constant 0 : index
    %c0_5 = arith.constant 0 : index
    %7 = vector.load %arg4[%c0_4, %c0_5] : memref<8x128xf32, #tpu.memory_space<vmem>>, vector<8x128xf32>
    %8 = vector.shape_cast %5 : vector<16x128xf32> to vector<2x8x128xf32>
    %cst = arith.constant dense<0.000000e+00> : vector<8x128xf32>
    %9 = vector.multi_reduction <add>, %8, %cst [0] : vector<2x8x128xf32> to vector<8x128xf32>
    %10 = arith.addf %7, %9 : vector<8x128xf32>
    %c0_6 = arith.constant 0 : index
    %c0_7 = arith.constant 0 : index
    %11 = vector.load %arg4[%c0_6, %c0_7] : memref<8x128xf32, #tpu.memory_space<vmem>>, vector<8x128xf32>
    tpu.vector_store %arg4[%c0_6, %c0_7], %10 {strides = array<i32>} : memref<8x128xf32, #tpu.memory_space<vmem>>, vector<8x128xf32>,
    %c0_8 = arith.constant 0 : index
    %c0_9 = arith.constant 0 : index
    %12 = vector.load %arg5[%c0_8, %c0_9] : memref<8x128xf32, #tpu.memory_space<vmem>>, vector<8x128xf32>
    %13 = vector.shape_cast %6 : vector<16x128xf32> to vector<2x8x128xf32>
    %cst_10 = arith.constant dense<0.000000e+00> : vector<8x128xf32>
    %14 = vector.multi_reduction <add>, %13, %cst_10 [0] : vector<2x8x128xf32> to vector<8x128xf32>
    %15 = arith.addf %12, %14 : vector<8x128xf32>
    %c0_11 = arith.constant 0 : index
    %c0_12 = arith.constant 0 : index
    %16 = vector.load %arg5[%c0_11, %c0_12] : memref<8x128xf32, #tpu.memory_space<vmem>>, vector<8x128xf32>
    tpu.vector_store %arg5[%c0_11, %c0_12], %15 {strides = array<i32>} : memref<8x128xf32, #tpu.memory_space<vmem>>, vector<8x128xf32>,
    return
  }
  func.func @transform_0(%arg0: i32, %arg1: i32) -> (i32, i32) {
    %c1_i32 = arith.constant 1 : i32
    %0 = arith.muli %arg0, %c1_i32 : i32
    %1 = arith.addi %0, %arg1 : i32
    %c0_i32 = arith.constant 0 : i32
    %c0_i32_0 = arith.constant 0 : i32
    return %1, %c0_i32 : i32, i32
  }
  func.func @transform_1(%arg0: i32, %arg1: i32) -> (i32, i32) {
    %c1_i32 = arith.constant 1 : i32
    %0 = arith.muli %arg0, %c1_i32 : i32
    %1 = arith.addi %0, %arg1 : i32
    %c0_i32 = arith.constant 0 : i32
    %c0_i32_0 = arith.constant 0 : i32
    return %1, %c0_i32 : i32, i32
  }
  func.func @transform_2(%arg0: i32, %arg1: i32) -> (i32, i32) {
    %c0_i32 = arith.constant 0 : i32
    %c0_i32_0 = arith.constant 0 : i32
    return %arg0, %c0_i32 : i32, i32
  }
  func.func @transform_3(%arg0: i32, %arg1: i32) -> (i32, i32) {
    %c0_i32 = arith.constant 0 : i32
    %c0_i32_0 = arith.constant 0 : i32
    return %arg0, %c0_i32 : i32, i32
  }
}

</mosaic_0001>

<bundles_post_ra>
// kernel: tpu_custom_call.1
= control target key start
LH: loop header
LB: loop body
LE: loop exit
PB: predicated region body
PF: predicated region fallthrough
CT: control target
= control target key end

     0   :  { %9 = vsyncpa [#allocation3], 0  ;;  %s284_s0 = inlined_call_operand.hbm [shape: f32[16,128], index: 0, kind: input, shape index: {}]   ;;  %s285_s1 = inlined_call_operand.hbm [shape: f32[16,128], index: 1, kind: input, shape index: {}]   ;;  %s286_s2 = inlined_call_operand.hbm [shape: f32[8,128], index: 2, kind: output, shape index: {0}]   ;;  %s287_s3 = inlined_call_operand.hbm [shape: f32[8,128], index: 3, kind: output, shape index: {1}]  }
   0x1   :  { %10 = vsyncpa [#allocation6], 0 }
   0x2   :  { %11 = vsyncpa [#allocation4], 0 }
   0x3   :  { %12 = vsyncpa [#allocation9], 0  ;;  %s210_s12 = smov [#allocation2]   ;;  %s114_s16 = scalar_lea.hbm %s284_s0, 256 }
   0x4   :  { %s22_s13 = sshll.u32 %s210_s12, 4  ;;  %p115_p0 = scmp.ne.s32.totalorder %s284_s0, %s114_s16  ;;  %s23_s13 = int_to_ptr.vmem [resolvable:$true] %s22_s13 }
   0x5   :  { %p118_p1 = scmp.lt.u32.totalorder %s114_s16, %s284_s0 }
   0x7   :  { %p120_p2 = pnand %p118_p1, %p115_p0 }
   0x9   :  { %123 = shalt.err (!%p120_p2)
}
   0xa   :  { %s124_s21 = scalar_lea.vmem %s23_s13, 256  ;;  %p129_p4 = scmp.lt.s32.totalorder %s23_s13, %s23_s13 }
   0xb   :  { %p125_p3 = scmp.ne.s32.totalorder %s23_s13, %s124_s21  ;;  %p130_p5 = scmp.lt.s32.totalorder %s124_s21, %s124_s21 }
   0xd   :  { %p131_p6 = por %p130_p5, %p129_p4 }
   0xf   :  { %p132_p7 = pnand %p131_p6, %p125_p3 }
  0x11   :  { %135 = shalt.err (!%p132_p7)
}
  0x12   :  { %s211_s22 = smov 128   ;;  %s212_s23 = smov 8  }
  0x13   :  { %28 = dma.hbm_to_vmem [thread:$0]  %s284_s0, 256, %s23_s13, [#allocation3], %s211_s22, %s211_s22, %s212_s23  }
  0x14   :  { %s213_s26 = smov [#allocation5]   ;;  %s136_s30 = scalar_lea.hbm %s285_s1, 256 }
  0x15   :  { %s38_s27 = sshll.u32 %s213_s26, 4  ;;  %p137_p8 = scmp.ne.s32.totalorder %s285_s1, %s136_s30  ;;  %s39_s27 = int_to_ptr.vmem [resolvable:$true] %s38_s27 }
  0x16   :  { %p140_p9 = scmp.lt.u32.totalorder %s136_s30, %s285_s1 }
  0x18   :  { %p142_p10 = pnand %p140_p9, %p137_p8 }
  0x1a   :  { %145 = shalt.err (!%p142_p10)
}
  0x1b   :  { %s146_s8 = scalar_lea.vmem %s39_s27, 256  ;;  %p151_p12 = scmp.lt.s32.totalorder %s39_s27, %s39_s27 }
  0x1c   :  { %p147_p11 = scmp.ne.s32.totalorder %s39_s27, %s146_s8  ;;  %p152_p13 = scmp.lt.s32.totalorder %s146_s8, %s146_s8 }
  0x1e   :  { %p153_p0 = por %p152_p13, %p151_p12 }
  0x20   :  { %p154_p1 = pnand %p153_p0, %p147_p11 }
  0x22   :  { %157 = shalt.err (!%p154_p1)
}
  0x23   :  { %44 = dma.hbm_to_vmem [thread:$0]  %s285_s1, 256, %s39_s27, [#allocation6], %s211_s22, %s211_s22, %s212_s23  }
  0x24   :  { %202 = dma.done.wait [#allocation3], 256  }
  0x25   :  { %203 = vsyncadd [#allocation3], 4294967040 }
  0x26   :  { %204 = dma.done.wait [#allocation6], 256  }
  0x27   :  { %205 = vsyncadd [#allocation6], 4294967040  ;;  %v61_v0 = vld [vmem:[#allocation2] sm:$0xff]  ;;  %v62_v1 = vld [vmem:[#allocation2 + $0x8] sm:$0xff]  ;;  %s214_s10 = smov [#allocation7]   ;;  %s215_s12 = smov [#allocation8]  }
  0x28   :  { %v63_v2 = vld [vmem:[#allocation5] sm:$0xff]  ;;  %v64_v3 = vld [vmem:[#allocation5 + $0x8] sm:$0xff]  ;;  %s83_s11 = sshll.u32 %s214_s10, 4  ;;  %s93_s13 = sshll.u32 %s215_s12, 4  ;;  %s84_s11 = int_to_ptr.vmem [resolvable:$true] %s83_s11  ;;  %s94_s13 = int_to_ptr.vmem [resolvable:$true] %s93_s13 }
  0x29   :  { %v65_v4 = vmul.f32 %v63_v2, %v61_v0  ;;  %v67_v5 = vadd.f32 %v63_v2, %v61_v0  ;;  %v66_v6 = vmul.f32 %v64_v3, %v62_v1  ;;  %v68_v7 = vadd.f32 %v64_v3, %v62_v1  ;;  %s158_s1 = scalar_lea.vmem %s84_s11, 128  ;;  %p163_p3 = scmp.lt.s32.totalorder %s84_s11, %s84_s11 }
  0x2a   :  { %p159_p2 = scmp.ne.s32.totalorder %s84_s11, %s158_s1  ;;  %p164_p4 = scmp.lt.s32.totalorder %s158_s1, %s158_s1 }
  0x2b   :  { %v70_v8 = vadd.f32 %v66_v6, %v65_v4  ;;  %v74_v9 = vadd.f32 %v68_v7, %v67_v5 }
  0x2c   :  { %p165_p5 = por %p164_p4, %p163_p3 }
  0x2d   :  { %72 = vst [vmem:[#allocation7] sm:$0xff] %v70_v8  ;;  %76 = vst [vmem:[#allocation8] sm:$0xff] %v74_v9 }
  0x2e   :  { %p166_p6 = pnand %p165_p5, %p159_p2 }
  0x30   :  { %169 = shalt.err (!%p166_p6)
}
  0x31   :  { %s170_s16 = scalar_lea.hbm %s286_s2, 128 }
  0x32   :  { %p171_p7 = scmp.ne.s32.totalorder %s286_s2, %s170_s16  ;;  %p174_p8 = scmp.lt.u32.totalorder %s170_s16, %s286_s2 }
  0x34   :  { %p176_p9 = pnand %p174_p8, %p171_p7 }
  0x36   :  { %179 = shalt.err (!%p176_p9)
}
  0x37   :  { %86 = dma.vmem_to_hbm [thread:$0]  %s84_s11, 128, %s286_s2, [#allocation4]  }
  0x38   :  { %s180_s23 = scalar_lea.vmem %s94_s13, 128  ;;  %p185_p11 = scmp.lt.s32.totalorder %s94_s13, %s94_s13 }
  0x39   :  { %p181_p10 = scmp.ne.s32.totalorder %s94_s13, %s180_s23  ;;  %p186_p12 = scmp.lt.s32.totalorder %s180_s23, %s180_s23 }
  0x3b   :  { %p187_p13 = por %p186_p12, %p185_p11 }
  0x3d   :  { %p188_p0 = pnand %p187_p13, %p181_p10 }
  0x3f   :  { %191 = shalt.err (!%p188_p0)
}
  0x40   :  { %s192_s26 = scalar_lea.hbm %s287_s3, 128 }
  0x41   :  { %p193_p1 = scmp.ne.s32.totalorder %s287_s3, %s192_s26  ;;  %p196_p2 = scmp.lt.u32.totalorder %s192_s26, %s287_s3 }
  0x43   :  { %p198_p3 = pnand %p196_p2, %p193_p1 }
  0x45   :  { %201 = shalt.err (!%p198_p3)
}
  0x46   :  { %96 = dma.vmem_to_hbm [thread:$0]  %s94_s13, 128, %s287_s3, [#allocation9]  }
  0x47   :  { %206 = dma.done.wait [#allocation4], 128  }
  0x48   :  { %207 = vsyncadd [#allocation4], 4294967168 }
  0x49   :  { %208 = dma.done.wait [#allocation9], 128  }
  0x4a   :  { %209 = vsyncadd [#allocation9], 4294967168 }
  0x4b   :  { %103 = vsyncpa [#allocation3], 1 }
  0x4c   :  { %104 = vsyncpa [#allocation6], 1 }
  0x4d   :  { %105 = vsyncpa [#allocation4], 1 }
  0x4e   :  { %106 = vsyncpa [#allocation9], 1 }

</bundles_post_ra>
